<compile_context>
chip_gen: v7x
topology: tpu7x:2x2x1
jax: 0.10.0
libtpu: 0.0.40
codegen_flags: <defaults>
</compile_context>

<pallas_src>
import functools
import math

import numpy as np
import jax
import jax.numpy as jnp
from jax.experimental import pallas as pl
from jax.experimental.pallas import tpu as pltpu


# ----------------------------------------------------------------------------
# Deterministic Gaussian kernel init (replicates scipy.ndimage.gaussian_filter
# applied to a centered delta of shape (k, k), mode='reflect', truncate=4.0).
# ----------------------------------------------------------------------------
def _gaussian_weights_1d(sigma, truncate=4.0):
    radius = int(truncate * sigma + 0.5)
    x = np.arange(-radius, radius + 1, dtype=np.float64)
    w = np.exp(-0.5 * (x / sigma) ** 2)
    w /= w.sum()
    return w, radius


def _gaussian_blur_kernel_1d(kernel_size):
    """1D folded Gaussian: gaussian_filter (reflect) applied to a length-K delta."""
    sigma = 0.3 * ((kernel_size - 1) * 0.5 - 1) + 0.8
    w, r = _gaussian_weights_1d(sigma)
    delta = np.zeros(kernel_size, dtype=np.float64)
    delta[kernel_size // 2] = 1.0
    padded = np.pad(delta, (r, r), mode="symmetric")  # scipy 'reflect' == numpy 'symmetric'
    g = np.array([np.dot(w, padded[i:i + 2 * r + 1]) for i in range(kernel_size)])
    return g


def _gaussian_blur_kernel_2d(kernel_size):
    """Direct 2D construction (used only to verify separability in __main__)."""
    sigma = 0.3 * ((kernel_size - 1) * 0.5 - 1) + 0.8
    w, r = _gaussian_weights_1d(sigma)
    n = np.zeros((kernel_size, kernel_size), dtype=np.float64)
    c = kernel_size // 2
    n[c, c] = 1.0
    out = n
    for axis in (0, 1):
        pad = [(r, r) if a == axis else (0, 0) for a in range(2)]
        padded = np.pad(out, pad, mode="symmetric")
        res = np.zeros_like(out)
        for i in range(kernel_size):
            if axis == 0:
                res[i, :] = np.tensordot(w, padded[i:i + 2 * r + 1, :], axes=(0, 0))
            else:
                res[:, i] = np.tensordot(w, padded[:, i:i + 2 * r + 1], axes=(0, 1))
        out = res
    return out.astype(np.float32)


# ----------------------------------------------------------------------------
# Pallas kernel: CT channels per grid step, in-kernel reflection halo,
# separable K-tap H pass then K-tap W pass. Taps are compile-time constants.
# ----------------------------------------------------------------------------
def _blur_plane_kernel(x_ref, o_ref, *, H, W, K, taps):
    p = K // 2
    xv = x_ref[...].astype(jnp.float32)                       # (CT, H, W)

    # --- reflection pad along H (sublane axis), built from the resident tile ---
    if p > 0:
        # padded row j (j<p)      -> original row p - j
        # padded row H+p+j (j<p)  -> original row H - 2 - j
        top = [xv[:, p - j:p - j + 1, :] for j in range(p)]
        bot = [xv[:, H - 2 - j:H - 1 - j, :] for j in range(p)]
        xh = jnp.concatenate(top + [xv] + bot, axis=1)         # (CT, H+2p, W)
    else:
        xh = xv

    # --- separable pass 1: K taps along H (sublane shifts only) ---
    t = taps[0] * xh[:, 0:H, :]
    for d in range(1, K):
        t = t + taps[d] * xh[:, d:d + H, :]                    # (CT, H, W)

    # --- reflection pad along W (lane axis) ---
    if p > 0:
        left = [t[:, :, p - j:p - j + 1] for j in range(p)]
        right = [t[:, :, W - 2 - j:W - 1 - j] for j in range(p)]
        tw = jnp.concatenate(left + [t] + right, axis=2)       # (CT, H, W+2p)
    else:
        tw = t

    # --- separable pass 2: K taps along W (only K lane shifts total) ---
    out = taps[0] * tw[:, :, 0:W]
    for d in range(1, K):
        out = out + taps[d] * tw[:, :, d:d + W]

    o_ref[...] = out.astype(o_ref.dtype)


def gaussian_blur(x, taps, kernel_size):
    """x: (N, C, H, W); taps: length-K tuple of Python floats (1D Gaussian)."""
    N, C, H, W = x.shape
    K = kernel_size
    taps = tuple(float(v) for v in taps)
    assert len(taps) == K
    p = K // 2
    assert H > p and W > p, "ReflectionPad2d requires spatial dims > pad"

    # Channel batching: amortize per-grid-step overhead; bound the input block
    # by a conservative VMEM budget (fits v5e/v6e/v7x scoped limits with
    # double-buffered in/out blocks plus in-kernel intermediates).
    plane_bytes = H * W * x.dtype.itemsize
    budget_bytes = 3 * 1024 * 1024
    ct = max(1, min(C, budget_bytes // max(1, plane_bytes)))
    while C % ct != 0:
        ct -= 1
    # TODO(synk): planes too large for a single VMEM block (huge H*W with ct=1)
    # would need spatial tiling with overlapping halos; not implemented here.

    kernel = functools.partial(_blur_plane_kernel, H=H, W=W, K=K, taps=taps)
    return pl.pallas_call(
        kernel,
        out_shape=jax.ShapeDtypeStruct((N, C, H, W), x.dtype),
        grid=(N, C // ct),
        in_specs=[pl.BlockSpec((None, ct, H, W), lambda n, c: (n, c, 0, 0))],
        out_specs=pl.BlockSpec((None, ct, H, W), lambda n, c: (n, c, 0, 0)),
        compiler_params=pltpu.CompilerParams(
            dimension_semantics=("parallel", "parallel"),
            vmem_limit_bytes=32 * 1024 * 1024),
    )(x)


class GaussianBlurLayer:
    """JAX/Pallas port of the PyTorch GaussianBlurLayer."""

    def __init__(self, channels, kernel_size):
        assert kernel_size % 2 != 0
        self.channels = channels
        self.kernel_size = kernel_size
        g1 = _gaussian_blur_kernel_1d(kernel_size)             # (K,)
        self.taps = tuple(float(v) for v in g1)
        # Full depthwise conv weight (C, 1, K, K), same Gaussian for every
        # channel — kept for reference / parity with the PyTorch module.
        k2d = np.outer(g1, g1).astype(np.float32)
        self.weight = jnp.asarray(
            np.broadcast_to(k2d, (channels, 1, kernel_size, kernel_size)).copy())

    def __call__(self, x):
        assert x.ndim == 4 and x.shape[1] == self.channels
        return gaussian_blur(x, self.taps, self.kernel_size)


if __name__ == "__main__":
    N, C, H, W = 2, 4, 16, 16
    K = 3

    key = jax.random.PRNGKey(0)
    x = jax.random.normal(key, (N, C, H, W), dtype=jnp.float32)

    layer = GaussianBlurLayer(C, K)

    # Sanity: the scipy-style 2D kernel is exactly the outer product of the 1D taps.
    k2d_direct = _gaussian_blur_kernel_2d(K)
    k2d_outer = np.outer(np.asarray(layer.taps), np.asarray(layer.taps)).astype(np.float32)
    assert np.allclose(k2d_direct, k2d_outer, atol=1e-6, rtol=1e-6)

    out = layer(x)
    out = jax.block_until_ready(out)

    # Reference check against XLA depthwise conv on a reflection-padded input.
    p = K // 2
    xp = jnp.pad(x, ((0, 0), (0, 0), (p, p), (p, p)), mode="reflect")
    ref_weight = jnp.asarray(
        np.broadcast_to(k2d_direct, (C, 1, K, K)).copy())
    ref = jax.lax.conv_general_dilated(
        xp, ref_weight, window_strides=(1, 1), padding="VALID",
        feature_group_count=C,
        dimension_numbers=("NCHW", "OIHW", "NCHW"))
    assert out.shape == (N, C, H, W)
    assert jnp.allclose(out, ref, atol=1e-5, rtol=1e-5)

    print("KERNEL_OK")
</pallas_src>

<mosaic_0001>
module attributes {stable_mosaic.version = 11 : i64} {
  func.func @_blur_plane_kernel(%arg0: i32, %arg1: i32, %arg2: memref<1x4x16x16xf32, #tpu.memory_space<vmem>>, %arg3: memref<1x4x16x16xf32, #tpu.memory_space<vmem>>) attributes {dimension_semantics = [#tpu.dimension_semantics<parallel>, #tpu.dimension_semantics<parallel>], iteration_bounds = array<i64: 2, 1>, scalar_prefetch = 0 : i64, scratch_operands = 0 : i64, tpu.core_type = #tpu.core_type<tc>, window_params = [{transform_indices = @transform_0, window_bounds = array<i64: 1, 4, 16, 16>}, {transform_indices = @transform_1, window_bounds = array<i64: 1, 4, 16, 16>}]} {
    %c0 = arith.constant 0 : index
    %c0_0 = arith.constant 0 : index
    %c0_1 = arith.constant 0 : index
    %c0_2 = arith.constant 0 : index
    %0 = vector.load %arg2[%c0, %c0_0, %c0_1, %c0_2] : memref<1x4x16x16xf32, #tpu.memory_space<vmem>>, vector<1x4x16x16xf32>
    %1 = vector.shape_cast %0 : vector<1x4x16x16xf32> to vector<4x16x16xf32>
    %2 = vector.extract_strided_slice %1 {offsets = [0, 1, 0], sizes = [4, 1, 16], strides = [1, 1, 1]} : vector<4x16x16xf32> to vector<4x1x16xf32>
    %3 = vector.extract_strided_slice %1 {offsets = [0, 14, 0], sizes = [4, 1, 16], strides = [1, 1, 1]} : vector<4x16x16xf32> to vector<4x1x16xf32>
    %4 = tpu.concatenate %2, %1, %3 in 1 : vector<4x1x16xf32>, vector<4x16x16xf32>, vector<4x1x16xf32> -> vector<4x18x16xf32>
    %5 = vector.extract_strided_slice %4 {offsets = [0, 0, 0], sizes = [4, 16, 16], strides = [1, 1, 1]} : vector<4x18x16xf32> to vector<4x16x16xf32>
    %cst = arith.constant 0.250221044 : f32
    %6 = vector.broadcast %cst : f32 to vector<4x16x16xf32>
    %7 = arith.mulf %6, %5 : vector<4x16x16xf32>
    %8 = vector.extract_strided_slice %4 {offsets = [0, 1, 0], sizes = [4, 16, 16], strides = [1, 1, 1]} : vector<4x18x16xf32> to vector<4x16x16xf32>
    %cst_3 = arith.constant 0.499557942 : f32
    %9 = vector.broadcast %cst_3 : f32 to vector<4x16x16xf32>
    %10 = arith.mulf %9, %8 : vector<4x16x16xf32>
    %11 = arith.addf %7, %10 : vector<4x16x16xf32>
    %12 = vector.extract_strided_slice %4 {offsets = [0, 2, 0], sizes = [4, 16, 16], strides = [1, 1, 1]} : vector<4x18x16xf32> to vector<4x16x16xf32>
    %cst_4 = arith.constant 0.250221044 : f32
    %13 = vector.broadcast %cst_4 : f32 to vector<4x16x16xf32>
    %14 = arith.mulf %13, %12 : vector<4x16x16xf32>
    %15 = arith.addf %11, %14 : vector<4x16x16xf32>
    %16 = vector.extract_strided_slice %15 {offsets = [0, 0, 1], sizes = [4, 16, 1], strides = [1, 1, 1]} : vector<4x16x16xf32> to vector<4x16x1xf32>
    %17 = vector.extract_strided_slice %15 {offsets = [0, 0, 14], sizes = [4, 16, 1], strides = [1, 1, 1]} : vector<4x16x16xf32> to vector<4x16x1xf32>
    %18 = tpu.concatenate %16, %15, %17 in 2 : vector<4x16x1xf32>, vector<4x16x16xf32>, vector<4x16x1xf32> -> vector<4x16x18xf32>
    %19 = vector.extract_strided_slice %18 {offsets = [0, 0, 0], sizes = [4, 16, 16], strides = [1, 1, 1]} : vector<4x16x18xf32> to vector<4x16x16xf32>
    %cst_5 = arith.constant 0.250221044 : f32
    %20 = vector.broadcast %cst_5 : f32 to vector<4x16x16xf32>
    %21 = arith.mulf %20, %19 : vector<4x16x16xf32>
    %22 = vector.extract_strided_slice %18 {offsets = [0, 0, 1], sizes = [4, 16, 16], strides = [1, 1, 1]} : vector<4x16x18xf32> to vector<4x16x16xf32>
    %cst_6 = arith.constant 0.499557942 : f32
    %23 = vector.broadcast %cst_6 : f32 to vector<4x16x16xf32>
    %24 = arith.mulf %23, %22 : vector<4x16x16xf32>
    %25 = arith.addf %21, %24 : vector<4x16x16xf32>
    %26 = vector.extract_strided_slice %18 {offsets = [0, 0, 2], sizes = [4, 16, 16], strides = [1, 1, 1]} : vector<4x16x18xf32> to vector<4x16x16xf32>
    %cst_7 = arith.constant 0.250221044 : f32
    %27 = vector.broadcast %cst_7 : f32 to vector<4x16x16xf32>
    %28 = arith.mulf %27, %26 : vector<4x16x16xf32>
    %29 = arith.addf %25, %28 : vector<4x16x16xf32>
    %c0_8 = arith.constant 0 : index
    %c0_9 = arith.constant 0 : index
    %c0_10 = arith.constant 0 : index
    %c0_11 = arith.constant 0 : index
    %30 = vector.load %arg3[%c0_8, %c0_9, %c0_10, %c0_11] : memref<1x4x16x16xf32, #tpu.memory_space<vmem>>, vector<1x4x16x16xf32>
    %31 = vector.shape_cast %30 : vector<1x4x16x16xf32> to vector<4x16x16xf32>
    %32 = vector.shape_cast %29 : vector<4x16x16xf32> to vector<1x4x16x16xf32>
    tpu.vector_store %arg3[%c0_8, %c0_9, %c0_10, %c0_11], %32 {strides = array<i32>} : memref<1x4x16x16xf32, #tpu.memory_space<vmem>>, vector<1x4x16x16xf32>,
    return
  }
  func.func @transform_0(%arg0: i32, %arg1: i32) -> (i32, i32, i32, i32) {
    %c0_i32 = arith.constant 0 : i32
    %c0_i32_0 = arith.constant 0 : i32
    %c0_i32_1 = arith.constant 0 : i32
    return %arg0, %arg1, %c0_i32, %c0_i32_0 : i32, i32, i32, i32
  }
  func.func @transform_1(%arg0: i32, %arg1: i32) -> (i32, i32, i32, i32) {
    %c0_i32 = arith.constant 0 : i32
    %c0_i32_0 = arith.constant 0 : i32
    %c0_i32_1 = arith.constant 0 : i32
    return %arg0, %arg1, %c0_i32, %c0_i32_0 : i32, i32, i32, i32
  }
}

</mosaic_0001>

<bundles_post_ra>
// kernel: tpu_custom_call.1
= control target key start
LH: loop header
LB: loop body
LE: loop exit
PB: predicated region body
PF: predicated region fallthrough
CT: control target
= control target key end

     0   :  { %6 = vsyncpa [#allocation3], 0  ;;  %s1162_s0 = inlined_call_operand.hbm [shape: f32[2,4,16,16], index: 0, kind: input, shape index: {}]   ;;  %s1163_s1 = inlined_call_operand.hbm [shape: f32[2,4,16,16], index: 1, kind: output, shape index: {}]  }
   0x1   :  { %8 = vsyncpa [#allocation3 + $0x1], 0 }
   0x2   :  { %9 = vsyncpa [#allocation4], 0 }
   0x3   :  { %11 = vsyncpa [#allocation4 + $0x1], 0  ;;  %s871_s6 = smov 0   ;;  %s873_s7 = smov 0  }
   0x4   :  { %s875_s8 = smov 0   ;;  %s877_s9 = smov 0  }
   0x5   :  { %s879_s10 = smov 0   ;;  %s881_s11 = smov 0  }
   0x6 LB: > { %s650_s12 = sadd.s32 4294967295, %s849_s11   ;;  %s651_s13 = sadd.s32 4294967294, %s849_s11   ;;  %s849_s11 = sphi %s881_s11, %s17_s11   ;;  %s845_s10 = sphi %s879_s10, %s1178_s10   ;;  %s841_s9 = sphi %s877_s9, %s1177_s9   ;;  %s837_s8 = sphi %s875_s8, %s1176_s8   ;;  %s833_s7 = sphi %s873_s7, %s1175_s7   ;;  %s829_s6 = sphi %s871_s6, %s1174_s6  }
   0x7   : > { %s29_s14 = sadd.s32 1, %s845_s10  ;;  %s38_s15 = sadd.s32 1, %s837_s8 }
   0x8   : > { %p31_p0 = scmp.ge.s32.totalorder %s29_s14, 2  ;;  %p45_p1 = scmp.ne.s32.totalorder %s837_s8, %s833_s7 }
   0x9   : > { %p46_p2 = scmp.eq.s32.totalorder %s849_s11, 0  ;;  %p51_p3 = scmp.ne.s32.totalorder %s833_s7, %s829_s6 }
   0xa   : > { %s1180_s14 = smov (%p31_p0, %s29_s14), 0  ;;  %p52_p5 = scmp.eq.s32.totalorder %s650_s12, 0 }
   0xb   : > { %p912_p4 = por %p46_p2, %p45_p1  ;;  %s33_s17 = ssub.s32 %s845_s10, %s1180_s14 }
   0xc   : > { %p77_p6 = scmp.eq.s32.totalorder %s650_s12, 1  ;;  %p36_p7 = scmp.eq.s32.totalorder %s33_s17, 0 }
   0xd   : > { %p918_p8 = por %p52_p5, %p51_p3  ;;  %p83_p10 = scmp.eq.s32.totalorder %s651_s13, 1 }
   0xe   : > { %p922_p9 = por %p77_p6, %p45_p1  ;;  %p679_p13 = scmp.lt.s32.totalorder %s849_s11, 2 }
   0xf   : > { %s927_s20 = scalar_select %p36_p7, %s837_s8, %s38_s15  }
  0x10   : > { %s1167_s19 = scalar_select %p922_p9, 1, 0 }
  0x11   : > { %p929_p11 = por %p83_p10, %p51_p3  ;;  %s103_s22 = sand.u32 1, %s837_s8  }
  0x12   : > { %s654_s23 = sshll.u32 %s103_s22, 6  ;;  %s665_s24 = sshll.u32 %s845_s10, 10 }
  0x13   : > { %s1168_s21 = scalar_select %p929_p11, 1, 0 }
  0x14   : > { %s940_s27 = scalar_lea.hbm %s1162_s0, %s665_s24  ;;  %s107_s28 = scalar_lea.vmem [#allocation2], %s654_s23 }
  0x15   : > { %s117_s29 = sshll.u32 %s107_s28, 4  ;;  %p946_p0 = pnand %p679_p13, %p912_p4  ;;  %s942_s29 = int_to_ptr.vmem [resolvable:$true] %s117_s29 }
  0x16   : > { %s951_s2 = scalar_lea.sflag [#allocation3], %s103_s22  ;;  %s737_s3 = scalar_lea.hbm %s940_s27, 1024 }
  0x17   : > { %p738_p2 = scmp.ne.s32.totalorder %s940_s27, %s737_s3  ;;  %p739_p3 = pneg %p946_p0 }
  0x18   : > { %s742_s12 = scalar_lea.hbm %s1162_s0, 2048  ;;  %p743_p4 = scmp.lt.u32.totalorder %s940_s27, %s1162_s0 }
  0x19   : > { %p740_p5 = pnand %p739_p3, %p738_p2  ;;  %p744_p7 = scmp.lt.u32.totalorder %s742_s12, %s737_s3 }
  0x1a   : > { %p746_p13 = scmp.lt.u32.totalorder %s737_s3, %s940_s27 }
  0x1b   : > { %p741_p6 = pneg %p740_p5  ;;  %p745_p10 = por %p744_p7, %p743_p4 }
  0x1d   : > { %p747_p12 = por %p746_p13, %p745_p10 }
  0x1f   : > { %p748_p1 = pnand %p747_p12, %p741_p6 }
  0x21   : > { %751 = shalt.err (!%p748_p1)
}
  0x22   : > { %s752_s16 = scalar_lea.vmem %s942_s29, 1024  ;;  %s851_s17 = smov [#allocation2]  }
  0x23   : > { %p753_p2 = scmp.ne.s32.totalorder %s942_s29, %s752_s16  ;;  %s757_s22 = sshll.u32 %s851_s17, 4  ;;  %s758_s22 = int_to_ptr.vmem [resolvable:$false] %s757_s22 }
  0x24   : > { %s759_s23 = scalar_lea.vmem %s758_s22, 2048  ;;  %p760_p9 = scmp.lt.s32.totalorder %s942_s29, %s758_s22 }
  0x25   : > { %p755_p5 = pnand %p753_p2, %p739_p3  ;;  %p761_p4 = scmp.lt.s32.totalorder %s759_s23, %s752_s16 }
  0x27   : > { %p756_p11 = pneg %p755_p5  ;;  %p762_p7 = por %p761_p4, %p760_p9 }
  0x29   : > { %p763_p10 = pnand %p762_p7, %p756_p11 }
  0x2b   : > { %766 = shalt.err (!%p763_p10)
}
  0x2c   : > { %s852_s24 = smov 128   ;;  %s853_s25 = smov 8  }
  0x2d   : > { %674 = dma.hbm_to_vmem [thread:$0]  (!%p946_p0), %s940_s27, 1024, %s942_s29, %s951_s2, %s852_s24, %s852_s24, %s853_s25  }
  0x2e   : > { %p125_p12 = scmp.lt.s32.totalorder %s849_s11, 3  ;;  %p1170_p1 = scmp.ge.s32.totalorder %s849_s11, 1 }
  0x30   : > { %p126_p3 = pnand %p1170_p1, %p125_p12 }
  0x31   : > { %s983_s26 = sand.u32 (!%p126_p3), 1, %s833_s7  }
  0x32   : > { %129 = sbr.rel (%p126_p3) target bundleno = 390 (0x186), region = 24  ;;  %s658_s28 = sshll.u32 (!%p126_p3), %s983_s26, 6 }
  0x33   : > { %s132_s3 = scalar_lea.sflag (!%p126_p3), [#allocation3], %s983_s26  ;;  %s989_s4 = scalar_lea.vmem (!%p126_p3), [#allocation2], %s658_s28 }
  0x39   : > { %820 = dma.done.wait (%p918_p8), %s132_s3, 1024  }
  0x3a   : > { %822 = vsyncadd (%p918_p8), %s132_s3, 4294966272  ;;  %v158_v0 = vld [vmem:[%s989_s4 + $0x10] sm:$0xff]  ;;  %v159_v1 = vld [vmem:[%s989_s4 + $0x18] sm:$0xff]  ;;  %vm180_vm0 = vcmask 1040384   ;;  %vm253_vm1 = vcmask 1046528   ;;  %vm306_vm2 = vcmask 1045504  }
  0x3b   : > { %v156_v2 = vld [vmem:[%s989_s4] sm:$0xff]  ;;  %v169_v3 = vrot.slane %v158_v0, 1  ;;  %v184_v4 = vrot.slane %v158_v0, 7  ;;  %v185_v5 = vrot.slane %v159_v1, 7  ;;  %v157_v6 = vld [vmem:[%s989_s4 + $0x8] sm:$0xff]  ;;  %v206_v11 = vrot.slane %v159_v1, 5 }
  0x3c   : > { %v168_v7 = vrot.slane %v156_v2, 1  ;;  %v1000_v8 = vld [vmem:[%s989_s4 + $0x20] sm:$0xff]  ;;  %v181_v9 = vrot.slane %v156_v2, 7  ;;  %v182_v10 = vrot.slane %v157_v6, 7  ;;  %v205_v12 = vrot.slane %v157_v6, 5  ;;  %v161_v13 = vld [vmem:[%s989_s4 + $0x28] sm:$0xff] }
  0x3d   : > { %v186_v14 = vsel %vm180_vm0, %v184_v4, %v185_v5  ;;  %v214_v15 = vsel %vm180_vm0, %v169_v3, %v184_v4  ;;  %v187_v16 = vrot.slane %v1000_v8, 7  ;;  %v188_v17 = vrot.slane %v161_v13, 7  ;;  %s854_s18 = smov 127   ;;  %v162_v62 = vld [vmem:[%s989_s4 + $0x30] sm:$0xff]  ;;  %v163_v63 = vld [vmem:[%s989_s4 + $0x38] sm:$0xff]  ;;  %s855_s27 = smov 1  }
  0x3e   : > { %v223_v18 = vmul.f32 0.25022104, %v214_v15  ;;  %v224_v19 = vmul.f32 0.25022104, %v186_v14  ;;  %v232_v20 = vmul.f32 0.49955794, %v214_v15  ;;  %v183_v21 = vsel %vm180_vm0, %v181_v9, %v182_v10 }
  0x3f   : > { %v233_v22 = vmul.f32 0.49955794, %v186_v14  ;;  %v213_v23 = vsel %vm180_vm0, %v168_v7, %v181_v9  ;;  %v222_v24 = vmul.f32 0.25022104, %v183_v21  ;;  %v230_v25 = vmul.f32 0.49955794, %v183_v21 }
  0x40   : > { %v259_v26 = vrot.slane %v232_v20, 1  ;;  %v312_v27 = vrot.slane %v223_v18, 2  ;;  %v313_v28 = vrot.slane %v224_v19, 2  ;;  %v221_v29 = vmul.f32 0.25022104, %v213_v23  ;;  %s856_s29 = smov 3  }
  0x41   : > { %v260_v30 = vrot.slane %v233_v22, 1  ;;  %v229_v31 = vmul.f32 0.49955794, %v213_v23  ;;  %v255_v32 = vrot.slane %v230_v25, 1  ;;  %v308_v33 = vrot.slane %v222_v24, 2  ;;  %s857_s30 = smov 126  }
  0x42   : > { %v314_v34 = vsel %vm306_vm2, %v312_v27, %v313_v28  ;;  %v307_v35 = vrot.slane %v221_v29, 2  ;;  %v218_v36 = vsel %vm180_vm0, %v185_v5, %v206_v11  ;;  %v217_v37 = vsel %vm180_vm0, %v182_v10, %v205_v12  ;;  %s1088_s2 = scalar_lea.vmem [#allocation5], %s658_s28  ;;  %s666_s5 = sshll.u32 %s841_s9, 10 }
  0x43   : > { %v261_v38 = vsel %vm253_vm1, %v259_v26, %v260_v30  ;;  %v254_v39 = vrot.slane %v229_v31, 1  ;;  %v234_v40 = vmul.f32 0.49955794, %v218_v36  ;;  %v291_v41 = vmul.f32 0.25022104, %v218_v36  ;;  %s563_s12 = sshll.u32 %s1088_s2, 4  ;;  %s1109_s16 = scalar_lea.hbm %s1163_s1, %s666_s5  ;;  %s1111_s12 = int_to_ptr.vmem [resolvable:$true] %s563_s12 }
  0x44   : > { %v284_v42 = vadd.f32 %v261_v38, %v223_v18  ;;  %v309_v43 = vsel %vm306_vm2, %v307_v35, %v308_v33  ;;  %v231_v44 = vmul.f32 0.49955794, %v217_v37  ;;  %v290_v45 = vmul.f32 0.25022104, %v217_v37  ;;  %s547_s9 = scalar_lea.sflag [#allocation4], %s983_s26  ;;  %s767_s17 = scalar_lea.vmem %s1111_s12, 1024 }
  0x45   : > { %v256_v46 = vsel %vm253_vm1, %v254_v39, %v255_v32  ;;  %v262_v47 = vrot.slane %v234_v40, 1  ;;  %v315_v48 = vrot.slane %v291_v41, 2  ;;  %v189_v49 = vsel %vm180_vm0, %v187_v16, %v188_v17  ;;  %p768_p8 = scmp.ne.s32.totalorder %s1111_s12, %s767_s17  ;;  %p1171_p9 = scmp.ne.s32.totalorder %s1167_s19, 0 }
  0x46   : > { %v1017_v50 = vadd.f32 %v314_v34, %v284_v42  ;;  %v282_v51 = vadd.f32 %v256_v46, %v221_v29  ;;  %v257_v52 = vrot.slane %v231_v44, 1  ;;  %v310_v53 = vrot.slane %v290_v45, 2  ;;  %s858_s22 = smov [#allocation5]  }
  0x47   : > { %v263_v54 = vsel %vm253_vm1, %v260_v30, %v262_v47  ;;  %v316_v55 = vsel %vm306_vm2, %v313_v28, %v315_v48  ;;  %v207_v56 = vrot.slane %v161_v13, 5  ;;  %v226_v57 = vmul.f32 0.25022104, %v189_v49  ;;  %p769_p11 = pnand %p768_p8, %p1171_p9  ;;  %s771_s23 = sshll.u32 %s858_s22, 4  ;;  %s772_s23 = int_to_ptr.vmem [resolvable:$false] %s771_s23 }
  0x48   : > { %355 = vrot.lane.b32.xlu1 %v1017_v50, %s854_s18  ;;  %v1023_v58 = vadd.f32 %v309_v43, %v282_v51  ;;  %v285_v59 = vadd.f32 %v263_v54, %v224_v19  ;;  %v258_v60 = vsel %vm253_vm1, %v255_v32, %v257_v52  ;;  %v311_v61 = vsel %vm306_vm2, %v308_v33, %v310_v53  ;;  %s773_s24 = scalar_lea.vmem %s772_s23, 2048  ;;  %p774_p6 = scmp.lt.s32.totalorder %s1111_s12, %s772_s23 }
  0x49   : > { %v283_v0 = vadd.f32 %v258_v60, %v222_v24  ;;  %v219_v1 = vsel %vm180_vm0, %v188_v17, %v207_v56  ;;  %v236_v2 = vmul.f32 0.49955794, %v189_v49  ;;  %v318_v3 = vrot.slane %v226_v57, 2  ;;  %p770_p0 = pneg %p769_p11  ;;  %p775_p13 = scmp.lt.s32.totalorder %s773_s24, %s767_s17 }
  0x4a   : > { %351 = vrot.lane.b32.xlu0 %v1023_v58, %s854_s18  ;;  %v1032_v4 = vadd.f32 %v316_v55, %v285_v59  ;;  %v237_v5 = vmul.f32 0.49955794, %v219_v1  ;;  %v292_v6 = vmul.f32 0.25022104, %v219_v1  ;;  %v170_v7 = vrot.slane %v1000_v8, 1 }
  0x4b   : > { %v336_v9 = vadd.f32 %v311_v61, %v283_v0  ;;  %v265_v10 = vrot.slane %v236_v2, 1  ;;  %v190_v11 = vrot.slane %v162_v62, 7  ;;  %v191_v12 = vrot.slane %v163_v63, 7  ;;  %p776_p2 = por %p775_p13, %p774_p6 }
  0x4c   : > { %357 = vrot.lane.b32.xlu1 %v1032_v4, %s854_s18  ;;  %v267_v13 = vrot.slane %v237_v5, 1  ;;  %v320_v14 = vrot.slane %v292_v6, 2  ;;  %v215_v15 = vsel %vm180_vm0, %v170_v7, %v187_v16  ;;  %v208_v17 = vrot.slane %v163_v63, 5 }
  0x4d   : > { %v225_v18 = vmul.f32 0.25022104, %v215_v15  ;;  %v235_v19 = vmul.f32 0.49955794, %v215_v15  ;;  %v192_v20 = vsel %vm180_vm0, %v190_v11, %v191_v12  ;;  %v171_v21 = vrot.slane %v162_v62, 1  ;;  %p777_p5 = pnand %p776_p2, %p770_p0 }
  0x4e   : > { %353 = vrot.lane.b32.xlu0 %v336_v9, %s854_s18  ;;  %v268_v22 = vsel %vm253_vm1, %v265_v10, %v267_v13  ;;  %v321_v23 = vsel %vm306_vm2, %v318_v3, %v320_v14  ;;  %v220_v24 = vsel %vm180_vm0, %v191_v12, %v208_v17  ;;  %v228_v25 = vmul.f32 0.25022104, %v192_v20 }
  0x4f   : > { %v287_v26 = vadd.f32 %v268_v22, %v226_v57  ;;  %v264_v27 = vrot.slane %v235_v19, 1  ;;  %v317_v8 = vrot.slane %v225_v18, 2  ;;  %v239_v28 = vmul.f32 0.49955794, %v192_v20 }
  0x50   : > { %v240_v16 = vmul.f32 0.49955794, %v220_v24  ;;  %v293_v29 = vmul.f32 0.25022104, %v220_v24  ;;  %v323_v30 = vrot.slane %v228_v25, 2  ;;  %v216_v31 = vsel %vm180_vm0, %v171_v21, %v190_v11 }
  0x51   : > { %v340_v32 = vadd.f32 %v321_v23, %v287_v26  ;;  %v266_v33 = vsel %vm253_vm1, %v264_v27, %v265_v10  ;;  %v319_v34 = vsel %vm306_vm2, %v317_v8, %v318_v3  ;;  %v270_v35 = vrot.slane %v239_v28, 1 }
  0x52   : > { %v286_v36 = vadd.f32 %v266_v33, %v225_v18  ;;  %v272_v37 = vrot.slane %v240_v16, 1  ;;  %v325_v38 = vrot.slane %v293_v29, 2  ;;  %v227_v39 = vmul.f32 0.25022104, %v216_v31 }
  0x53   : > { %361 = vrot.lane.b32.xlu1 %v340_v32, %s854_s18  ;;  %v238_v40 = vmul.f32 0.49955794, %v216_v31  ;;  %vm423_vm3 = vcmask 7168   ;;  %vm432_vm4 = vcmask 138240   ;;  %vm537_vm5 = vcmask 130048  }
  0x54   : > { %v339_v41 = vadd.f32 %v319_v34, %v286_v36  ;;  %v273_v42 = vsel %vm253_vm1, %v270_v35, %v272_v37  ;;  %v326_v43 = vsel %vm306_vm2, %v323_v30, %v325_v38  ;;  %v322_v44 = vrot.slane %v227_v39, 2 }
  0x55   : > { %v289_v45 = vadd.f32 %v273_v42, %v228_v25  ;;  %v269_v46 = vrot.slane %v238_v40, 1 }
  0x56   : > { %359 = vrot.lane.b32.xlu0 %v339_v41, %s854_s18  ;;  %v324_v49 = vsel %vm306_vm2, %v322_v44, %v323_v30 }
  0x57   : > { %v342_v47 = vadd.f32 %v326_v43, %v289_v45  ;;  %v271_v48 = vsel %vm253_vm1, %v269_v46, %v270_v35 }
  0x58   : > { %v288_v51 = vadd.f32 %v271_v48, %v227_v39 }
  0x59   : > { %365 = vrot.lane.b32.xlu1 %v342_v47, %s854_s18 }
  0x5a   : > { %v341_v52 = vadd.f32 %v324_v49, %v288_v51 }
  0x5c   : > { %363 = vrot.lane.b32.xlu0 %v341_v52, %s854_s18 }
  0x5d   : > { %377 = vrot.lane.b32.xlu1 %v336_v9, %s855_s27 }
  0x60   : > { %375 = vrot.lane.b32.xlu0 %v1023_v58, %s855_s27 }
  0x61   : > { %381 = vrot.lane.b32.xlu1 %v1032_v4, %s855_s27 }
  0x64   : > { %379 = vrot.lane.b32.xlu0 %v1017_v50, %s855_s27 }
  0x65   : > { %385 = vrot.lane.b32.xlu1 %v340_v32, %s855_s27 }
  0x68   : > { %383 = vrot.lane.b32.xlu0 %v339_v41, %s855_s27 }
  0x69   : > { %389 = vrot.lane.b32.xlu1 %v342_v47, %s855_s27 }
  0x6c   : > { %387 = vrot.lane.b32.xlu0 %v341_v52, %s855_s27 }
  0x6d   : > { %401 = vrot.lane.b32.xlu1 %v336_v9, %s856_s29 }
  0x70   : > { %399 = vrot.lane.b32.xlu0 %v1023_v58, %s856_s29 }
  0x71   : > { %405 = vrot.lane.b32.xlu1 %v1032_v4, %s856_s29 }
  0x74   : > { %403 = vrot.lane.b32.xlu0 %v1017_v50, %s856_s29 }
  0x75   : > { %409 = vrot.lane.b32.xlu1 %v340_v32, %s856_s29 }
  0x78   : > { %407 = vrot.lane.b32.xlu0 %v339_v41, %s856_s29 }
  0x79   : > { %413 = vrot.lane.b32.xlu1 %v342_v47, %s856_s29 }
  0x7c   : > { %411 = vrot.lane.b32.xlu0 %v341_v52, %s856_s29 }
  0xba   : > { %v356_v53 = vpop.permute.xlu1 %355 }
  0xbc   : > { %v352_v54 = vpop.permute.xlu0 %351 }
  0xbe   : > { %v358_v55 = vpop.permute.xlu1 %357 }
  0xc0   : > { %v354_v56 = vpop.permute.xlu0 %353 }
  0xc5   : > { %v362_v57 = vpop.permute.xlu1 %361 }
  0xc8   : > { %v360_v59 = vpop.permute.xlu0 %359 }
  0xcb   : > { %v366_v60 = vpop.permute.xlu1 %365 }
  0xce   : > { %v364_v61 = vpop.permute.xlu0 %363 }
  0xcf   : > { %v378_v62 = vpop.permute.xlu1 %377 }
  0xd0   : > { %v425_v4 = vsel %vm423_vm3, %v354_v56, %v378_v62 }
  0xd2   : > { %v376_v63 = vpop.permute.xlu0 %375 }
  0xd3   : > { %v382_v0 = vpop.permute.xlu1 %381  ;;  %v424_v9 = vsel %vm423_vm3, %v352_v54, %v376_v63 }
  0xd4   : > { %v427_v11 = vsel %vm423_vm3, %v358_v55, %v382_v0 }
  0xd6   : > { %v380_v58 = vpop.permute.xlu0 %379 }
  0xd7   : > { %v386_v1 = vpop.permute.xlu1 %385  ;;  %v426_v18 = vsel %vm423_vm3, %v356_v53, %v380_v58 }
  0xd8   : > { %v429_v20 = vsel %vm423_vm3, %v362_v57, %v386_v1 }
  0xda   : > { %v384_v2 = vpop.permute.xlu0 %383 }
  0xdb   : > { %v390_v3 = vpop.permute.xlu1 %389  ;;  %v428_v26 = vsel %vm423_vm3, %v360_v59, %v384_v2 }
  0xdc   : > { %v431_v8 = vsel %vm423_vm3, %v366_v60, %v390_v3 }
  0xde   : > { %v388_v50 = vpop.permute.xlu0 %387 }
  0xdf   : > { %v402_v5 = vpop.permute.xlu1 %401  ;;  %v430_v32 = vsel %vm423_vm3, %v364_v61, %v388_v50 }
  0xe0   : > { %v434_v6 = vsel %vm432_vm4, %v425_v4, %v402_v5 }
  0xe1   : > { %v450_v7 = vmul.f32 0.49955794, %v434_v6  ;;  %v442_v36 = vmul.f32 0.25022104, %v434_v6 }
  0xe2   : > { %v400_v10 = vpop.permute.xlu0 %399 }
  0xe3   : > { %v433_v12 = vsel %vm432_vm4, %v424_v9, %v400_v10  ;;  %v406_v13 = vpop.permute.xlu1 %405  ;;  %467 = vrot.lane.b32.xlu1 %v450_v7, %s854_s18 }
  0xe4   : > { %v449_v14 = vmul.f32 0.49955794, %v433_v12  ;;  %v436_v15 = vsel %vm432_vm4, %v427_v11, %v406_v13  ;;  %v441_v37 = vmul.f32 0.25022104, %v433_v12 }
  0xe5   : > { %v452_v17 = vmul.f32 0.49955794, %v436_v15  ;;  %v444_v38 = vmul.f32 0.25022104, %v436_v15 }
  0xe6   : > { %465 = vrot.lane.b32.xlu0 %v449_v14, %s854_s18  ;;  %v404_v19 = vpop.permute.xlu0 %403 }
  0xe7   : > { %v435_v21 = vsel %vm432_vm4, %v426_v18, %v404_v19  ;;  %v410_v22 = vpop.permute.xlu1 %409  ;;  %471 = vrot.lane.b32.xlu1 %v452_v17, %s854_s18 }
  0xe8   : > { %v451_v23 = vmul.f32 0.49955794, %v435_v21  ;;  %v438_v24 = vsel %vm432_vm4, %v429_v20, %v410_v22  ;;  %v443_v39 = vmul.f32 0.25022104, %v435_v21 }
  0xe9   : > { %v454_v25 = vmul.f32 0.49955794, %v438_v24  ;;  %v446_v40 = vmul.f32 0.25022104, %v438_v24 }
  0xea   : > { %469 = vrot.lane.b32.xlu0 %v451_v23, %s854_s18  ;;  %v408_v27 = vpop.permute.xlu0 %407 }
  0xeb   : > { %v437_v28 = vsel %vm432_vm4, %v428_v26, %v408_v27  ;;  %v414_v16 = vpop.permute.xlu1 %413  ;;  %475 = vrot.lane.b32.xlu1 %v454_v25, %s854_s18 }
  0xec   : > { %v453_v29 = vmul.f32 0.49955794, %v437_v28  ;;  %v440_v30 = vsel %vm432_vm4, %v431_v8, %v414_v16  ;;  %v445_v41 = vmul.f32 0.25022104, %v437_v28 }
  0xed   : > { %v456_v31 = vmul.f32 0.49955794, %v440_v30  ;;  %v448_v42 = vmul.f32 0.25022104, %v440_v30 }
  0xee   : > { %473 = vrot.lane.b32.xlu0 %v453_v29, %s854_s18  ;;  %v412_v33 = vpop.permute.xlu0 %411 }
  0xef   : > { %v439_v34 = vsel %vm432_vm4, %v430_v32, %v412_v33  ;;  %479 = vrot.lane.b32.xlu1 %v456_v31, %s854_s18 }
  0xf0   : > { %v455_v35 = vmul.f32 0.49955794, %v439_v34  ;;  %v447_v43 = vmul.f32 0.25022104, %v439_v34 }
  0xf2   : > { %477 = vrot.lane.b32.xlu0 %v455_v35, %s854_s18 }
  0xf3   : > { %507 = vrot.lane.b32.xlu1 %v442_v36, %s857_s30 }
  0xf6   : > { %505 = vrot.lane.b32.xlu0 %v441_v37, %s857_s30 }
  0xf7   : > { %511 = vrot.lane.b32.xlu1 %v444_v38, %s857_s30 }
  0xfa   : > { %509 = vrot.lane.b32.xlu0 %v443_v39, %s857_s30 }
  0xfb   : > { %515 = vrot.lane.b32.xlu1 %v446_v40, %s857_s30 }
  0xfe   : > { %513 = vrot.lane.b32.xlu0 %v445_v41, %s857_s30 }
  0xff   : > { %519 = vrot.lane.b32.xlu1 %v448_v42, %s857_s30 }
 0x102   : > { %517 = vrot.lane.b32.xlu0 %v447_v43, %s857_s30 }
 0x155   : > { %v468_v44 = vpop.permute.xlu1 %467 }
 0x156   : > { %v490_v52 = vadd.f32 %v468_v44, %v442_v36 }
 0x158   : > { %v466_v45 = vpop.permute.xlu0 %465 }
 0x159   : > { %v472_v46 = vpop.permute.xlu1 %471  ;;  %v489_v56 = vadd.f32 %v466_v45, %v441_v37 }
 0x15a   : > { %v492_v57 = vadd.f32 %v472_v46, %v444_v38 }
 0x15c   : > { %v470_v47 = vpop.permute.xlu0 %469 }
 0x15d   : > { %v476_v48 = vpop.permute.xlu1 %475  ;;  %v491_v63 = vadd.f32 %v470_v47, %v443_v39 }
 0x15e   : > { %v494_v0 = vadd.f32 %v476_v48, %v446_v40 }
 0x160   : > { %v474_v49 = vpop.permute.xlu0 %473 }
 0x161   : > { %v480_v51 = vpop.permute.xlu1 %479  ;;  %v493_v50 = vadd.f32 %v474_v49, %v445_v41 }
 0x162   : > { %v496_v4 = vadd.f32 %v480_v51, %v448_v42 }
 0x164   : > { %v478_v53 = vpop.permute.xlu0 %477 }
 0x165   : > { %v508_v54 = vpop.permute.xlu1 %507  ;;  %v495_v10 = vadd.f32 %v478_v53, %v447_v43 }
 0x166   : > { %v530_v55 = vadd.f32 %v508_v54, %v490_v52 }
 0x168   : > { %539 = vst.msk [vmem:[%s1088_s2 + $0x8] sm:$0xff] %vm537_vm5, %v530_v55  ;;  %v506_v59 = vpop.permute.xlu0 %505 }
 0x169   : > { %v529_v60 = vadd.f32 %v506_v59, %v489_v56  ;;  %v512_v61 = vpop.permute.xlu1 %511 }
 0x16a   : > { %v532_v62 = vadd.f32 %v512_v61, %v492_v57 }
 0x16b   : > { %538 = vst.msk [vmem:[%s1088_s2] sm:$0xff] %vm537_vm5, %v529_v60 }
 0x16c   : > { %541 = vst.msk [vmem:[%s1088_s2 + $0x18] sm:$0xff] %vm537_vm5, %v532_v62  ;;  %v510_v58 = vpop.permute.xlu0 %509 }
 0x16d   : > { %v531_v1 = vadd.f32 %v510_v58, %v491_v63  ;;  %v516_v2 = vpop.permute.xlu1 %515 }
 0x16e   : > { %v534_v3 = vadd.f32 %v516_v2, %v494_v0 }
 0x16f   : > { %540 = vst.msk [vmem:[%s1088_s2 + $0x10] sm:$0xff] %vm537_vm5, %v531_v1 }
 0x170   : > { %543 = vst.msk [vmem:[%s1088_s2 + $0x28] sm:$0xff] %vm537_vm5, %v534_v3  ;;  %v514_v5 = vpop.permute.xlu0 %513 }
 0x171   : > { %v533_v6 = vadd.f32 %v514_v5, %v493_v50  ;;  %v520_v7 = vpop.permute.xlu1 %519 }
 0x172   : > { %v536_v9 = vadd.f32 %v520_v7, %v496_v4 }
 0x173   : > { %542 = vst.msk [vmem:[%s1088_s2 + $0x20] sm:$0xff] %vm537_vm5, %v533_v6 }
 0x174   : > { %545 = vst.msk [vmem:[%s1088_s2 + $0x38] sm:$0xff] %vm537_vm5, %v536_v9  ;;  %v518_v11 = vpop.permute.xlu0 %517 }
 0x175   : > { %v535_v12 = vadd.f32 %v518_v11, %v495_v10 }
 0x177   : > { %544 = vst.msk [vmem:[%s1088_s2 + $0x30] sm:$0xff] %vm537_vm5, %v535_v12 }
 0x178   : > { %780 = shalt.err (!%p777_p5)
}
 0x179   : > { %s781_s25 = scalar_lea.hbm %s1109_s16, 1024  ;;  %s785_s4 = scalar_lea.hbm %s1163_s1, 2048 }
 0x17a   : > { %p782_p4 = scmp.ne.s32.totalorder %s1109_s16, %s781_s25  ;;  %p786_p12 = scmp.lt.u32.totalorder %s1109_s16, %s1163_s1 }
 0x17b   : > { %p787_p1 = scmp.lt.u32.totalorder %s785_s4, %s781_s25  ;;  %p789_p8 = scmp.lt.u32.totalorder %s781_s25, %s1109_s16 }
 0x17c   : > { %p783_p7 = pnand %p782_p4, %p1171_p9 }
 0x17d   : > { %p788_p3 = por %p787_p1, %p786_p12 }
 0x17e   : > { %p784_p10 = pneg %p783_p7 }
 0x17f   : > { %p790_p11 = por %p789_p8, %p788_p3 }
 0x181   : > { %p791_p0 = pnand %p790_p11, %p784_p10 }
 0x183   : > { %794 = shalt.err (!%p791_p0)
}
 0x184   : > { %s859_s29 = smov 128   ;;  %s860_s30 = smov 8  }
 0x185   : > { %669 = dma.vmem_to_hbm [thread:$0]  (%p1171_p9), %s1111_s12, 1024, %s1109_s16, %s547_s9, %s859_s29, %s859_s29, %s860_s30  }
 0x186 PF: > { %s578_s2 = sand.u32 1, %s829_s6   ;;  %p1172_p6 = scmp.ne.s32.totalorder %s1168_s21, 0 }
 0x187   : > { %p1173_p13 = scmp.ge.s32.totalorder %s849_s11, 2  ;;  %s579_s5 = scalar_lea.sflag [#allocation4], %s578_s2 }
 0x189   : > { %p676_p2 = pnand %p1173_p13, %p1172_p6 }
 0x18b   : > { %824 = dma.done.wait (!%p676_p2), %s579_s5, 1024  }
 0x18c   : > { %826 = vsyncadd (!%p676_p2), %s579_s5, 4294966272  ;;  %s17_s11 = sadd.s32 1, %s849_s11   ;;  %s1174_s6 = smov %s833_s7 }
 0x18d   : > { %p14_p5 = scmp.ge.s32.totalorder %s17_s11, 4   ;;  %s1175_s7 = smov %s837_s8 }
 0x18e   : > { %s1176_s8 = smov %s927_s20  ;;  %s1177_s9 = smov %s845_s10 }
 0x18f   : > { %s1178_s10 = smov %s1180_s14  ;;  %16 = sbr.rel (!%p14_p5) target bundleno = 6 (0x6), region = 69 }
 0x196   :  { %584 = vsyncpa [#allocation3], 1 }
 0x197   :  { %586 = vsyncpa [#allocation3 + $0x1], 1 }
 0x198   :  { %587 = vsyncpa [#allocation4], 1 }
 0x199   :  { %589 = vsyncpa [#allocation4 + $0x1], 1 }

</bundles_post_ra>
